<compile_context>
chip_gen: v5e
topology: v5e:2x2
jax: 0.10.0
libtpu: 0.0.40
codegen_flags: <defaults>
</compile_context>

<pallas_src>
import numpy as np
import jax
import jax.numpy as jnp
from jax.experimental import pallas as pl
from jax.experimental.pallas import tpu as pltpu


def _round_up(x: int, m: int) -> int:
    return ((x + m - 1) // m) * m


def _make_spd_vectorize_kernel(n: int, k: int, coalesce: bool,
                               lanes_per_store: int = 1024):
    """Kernel: x_ref (TB, N*N) -> o_ref (TB, K) triu row-major gather."""
    # TODO(synk): for N >= ~256, switch the static row loop to a
    # lax.fori_loop over fixed-width row groups to bound program size.

    def kernel(x_ref, o_ref):
        if coalesce:
            # Assemble groups of rows in registers and issue one wide store
            # per group (one single full store when K <= lanes_per_store).
            off, r = 0, 0
            while r < n:
                pieces, w = [], 0
                while r < n and (w == 0 or w + (n - r) <= lanes_per_store):
                    pieces.append(x_ref[:, r * n + r: r * n + n])
                    w += n - r
                    r += 1
                chunk = pieces[0] if len(pieces) == 1 else jnp.concatenate(
                    pieces, axis=-1)
                if off == 0 and w == k:
                    o_ref[...] = chunk
                else:
                    o_ref[:, off:off + w] = chunk
                off += w
        else:
            # Fallback: one (lane-masked) store per matrix row.
            off = 0
            for r in range(n):
                w = n - r
                o_ref[:, off:off + w] = x_ref[:, r * n + r: r * n + n]
                off += w

    return kernel


def _pick_batch_tile(b: int, n: int, k: int, dtype) -> int:
    """Batch tile that (a) keeps the real, layout-padded, double-buffered VMEM
    footprint within budget on v5e/v6e/v7x, (b) is a multiple of the dtype's
    sublane-packing factor, and (c) leaves >= 2 grid steps when B allows."""
    itemsize = jnp.dtype(dtype).itemsize
    sub = max(8, 32 // max(itemsize, 1))           # 8 f32 / 16 bf16 / 32 int8
    in_lanes = _round_up(n * n, 128)               # lane-padded input block row
    out_lanes = _round_up(k, 128)                  # lane-padded output block row
    per_row = (in_lanes + out_lanes) * itemsize
    # One (input + output) block; Pallas double-buffers both, so total
    # in-flight VMEM ~= 2 * budget = 12 MiB: under v5e's 16 MiB default scoped
    # VMEM and comfortably inside v7x's 64 MiB physical per-TC.
    budget = 6 * 1024 * 1024
    max_tb = max(sub, (budget // per_row) // sub * sub)

    if b <= max_tb:
        if b >= 4 * sub:
            # Split so the grid has >= 2 steps (pipelining / v7x 2nd core),
            # preferring an exact divisor of B (no batch padding).
            half = min(max_tb, _round_up((b + 1) // 2, sub))
            for tb in range(half, sub - 1, -sub):
                if b % tb == 0:
                    return tb
            return half
        return b                                   # tiny batch: one full block
    # Large batch: biggest tile within budget that divides B exactly, else pad.
    for tb in range(max_tb, sub - 1, -sub):
        if b % tb == 0:
            return tb
    return max_tb


def make_spd_vectorize(input_size: int):
    """Build the SPDVectorize forward fn for matrices of size `input_size`."""
    n = input_size
    row_idx, col_idx = np.triu_indices(n)          # the module's buffers
    k = row_idx.shape[0]                           # = n*(n+1)//2

    def build(b_pad: int, tb: int, dtype, coalesce: bool):
        return pl.pallas_call(
            _make_spd_vectorize_kernel(n, k, coalesce),
            out_shape=jax.ShapeDtypeStruct((b_pad, k), dtype),
            grid=(b_pad // tb,),
            in_specs=[pl.BlockSpec((tb, n * n), lambda i: (i, 0))],
            out_specs=pl.BlockSpec((tb, k), lambda i: (i, 0)),
            compiler_params=pltpu.CompilerParams(
                dimension_semantics=("parallel",)),
        )

    def forward(x):
        assert x.ndim == 3 and x.shape[1] == n and x.shape[2] == n
        b = x.shape[0]
        x_flat = x.reshape(b, n * n)               # contiguous, lane-dense input
        tb = _pick_batch_tile(b, n, k, x.dtype)
        b_pad = _round_up(b, tb)
        if b_pad != b:                             # non-divisible batch: pad
            x_flat = jnp.pad(x_flat, ((0, b_pad - b), (0, 0)))
        try:
            # Preferred path: register-coalesced wide stores.
            out = build(b_pad, tb, x_flat.dtype, coalesce=True)(x_flat)
        except Exception:
            # Fallback (eager call path only): per-row masked stores, in case
            # unaligned lane concatenation is rejected by this Mosaic build.
            out = build(b_pad, tb, x_flat.dtype, coalesce=False)(x_flat)
        return out if b_pad == b else out[:b]

    return forward, (row_idx, col_idx)


if __name__ == "__main__":
    B, N = 2, 16  # small shapes: batch=2, SPD matrix 16x16 -> K = 136

    key = jax.random.PRNGKey(0)
    a = jax.random.normal(key, (B, N, N), dtype=jnp.float32)
    x = a @ jnp.swapaxes(a, -1, -2) + N * jnp.eye(N, dtype=jnp.float32)  # SPD

    fwd, (row_idx, col_idx) = make_spd_vectorize(N)
    out = fwd(x)
    out = jax.block_until_ready(out)

    # Reference: exact gather semantics of the PyTorch module.
    ref = x[:, jnp.asarray(row_idx), jnp.asarray(col_idx)]
    assert out.shape == (B, N * (N + 1) // 2)
    assert out.dtype == x.dtype
    np.testing.assert_allclose(np.asarray(out), np.asarray(ref), rtol=0, atol=0)

    print("KERNEL_OK")
</pallas_src>

<mosaic_0001>
module attributes {stable_mosaic.version = 11 : i64} {
  func.func @kernel(%arg0: i32, %arg1: memref<2x256xf32, #tpu.memory_space<vmem>>, %arg2: memref<2x136xf32, #tpu.memory_space<vmem>>) attributes {dimension_semantics = [#tpu.dimension_semantics<parallel>], iteration_bounds = array<i64: 1>, scalar_prefetch = 0 : i64, scratch_operands = 0 : i64, tpu.core_type = #tpu.core_type<tc>, window_params = [{transform_indices = @transform_0, window_bounds = array<i64: 2, 256>}, {transform_indices = @transform_1, window_bounds = array<i64: 2, 136>}]} {
    %c0 = arith.constant 0 : index
    %c0_0 = arith.constant 0 : index
    %0 = vector.load %arg1[%c0, %c0_0] : memref<2x256xf32, #tpu.memory_space<vmem>>, vector<2x16xf32>
    %c0_1 = arith.constant 0 : index
    %c17 = arith.constant 17 : index
    %1 = vector.load %arg1[%c0_1, %c17] : memref<2x256xf32, #tpu.memory_space<vmem>>, vector<2x15xf32>
    %c0_2 = arith.constant 0 : index
    %c34 = arith.constant 34 : index
    %2 = vector.load %arg1[%c0_2, %c34] : memref<2x256xf32, #tpu.memory_space<vmem>>, vector<2x14xf32>
    %c0_3 = arith.constant 0 : index
    %c51 = arith.constant 51 : index
    %3 = vector.load %arg1[%c0_3, %c51] : memref<2x256xf32, #tpu.memory_space<vmem>>, vector<2x13xf32>
    %c0_4 = arith.constant 0 : index
    %c68 = arith.constant 68 : index
    %4 = vector.load %arg1[%c0_4, %c68] : memref<2x256xf32, #tpu.memory_space<vmem>>, vector<2x12xf32>
    %c0_5 = arith.constant 0 : index
    %c85 = arith.constant 85 : index
    %5 = vector.load %arg1[%c0_5, %c85] : memref<2x256xf32, #tpu.memory_space<vmem>>, vector<2x11xf32>
    %c0_6 = arith.constant 0 : index
    %c102 = arith.constant 102 : index
    %6 = vector.load %arg1[%c0_6, %c102] : memref<2x256xf32, #tpu.memory_space<vmem>>, vector<2x10xf32>
    %c0_7 = arith.constant 0 : index
    %c119 = arith.constant 119 : index
    %7 = vector.load %arg1[%c0_7, %c119] : memref<2x256xf32, #tpu.memory_space<vmem>>, vector<2x9xf32>
    %c0_8 = arith.constant 0 : index
    %c136 = arith.constant 136 : index
    %8 = vector.load %arg1[%c0_8, %c136] : memref<2x256xf32, #tpu.memory_space<vmem>>, vector<2x8xf32>
    %c0_9 = arith.constant 0 : index
    %c153 = arith.constant 153 : index
    %9 = vector.load %arg1[%c0_9, %c153] : memref<2x256xf32, #tpu.memory_space<vmem>>, vector<2x7xf32>
    %c0_10 = arith.constant 0 : index
    %c170 = arith.constant 170 : index
    %10 = vector.load %arg1[%c0_10, %c170] : memref<2x256xf32, #tpu.memory_space<vmem>>, vector<2x6xf32>
    %c0_11 = arith.constant 0 : index
    %c187 = arith.constant 187 : index
    %11 = vector.load %arg1[%c0_11, %c187] : memref<2x256xf32, #tpu.memory_space<vmem>>, vector<2x5xf32>
    %c0_12 = arith.constant 0 : index
    %c204 = arith.constant 204 : index
    %12 = vector.load %arg1[%c0_12, %c204] : memref<2x256xf32, #tpu.memory_space<vmem>>, vector<2x4xf32>
    %c0_13 = arith.constant 0 : index
    %c221 = arith.constant 221 : index
    %13 = vector.load %arg1[%c0_13, %c221] : memref<2x256xf32, #tpu.memory_space<vmem>>, vector<2x3xf32>
    %c0_14 = arith.constant 0 : index
    %c238 = arith.constant 238 : index
    %14 = vector.load %arg1[%c0_14, %c238] : memref<2x256xf32, #tpu.memory_space<vmem>>, vector<2x2xf32>
    %c0_15 = arith.constant 0 : index
    %c255 = arith.constant 255 : index
    %15 = vector.load %arg1[%c0_15, %c255] : memref<2x256xf32, #tpu.memory_space<vmem>>, vector<2x1xf32>
    %16 = tpu.concatenate %0, %1, %2, %3, %4, %5, %6, %7, %8, %9, %10, %11, %12, %13, %14, %15 in 1 : vector<2x16xf32>, vector<2x15xf32>, vector<2x14xf32>, vector<2x13xf32>, vector<2x12xf32>, vector<2x11xf32>, vector<2x10xf32>, vector<2x9xf32>, vector<2x8xf32>, vector<2x7xf32>, vector<2x6xf32>, vector<2x5xf32>, vector<2x4xf32>, vector<2x3xf32>, vector<2x2xf32>, vector<2x1xf32> -> vector<2x136xf32>
    %c0_16 = arith.constant 0 : index
    %c0_17 = arith.constant 0 : index
    %17 = vector.load %arg2[%c0_16, %c0_17] : memref<2x136xf32, #tpu.memory_space<vmem>>, vector<2x136xf32>
    tpu.vector_store %arg2[%c0_16, %c0_17], %16 {strides = array<i32>} : memref<2x136xf32, #tpu.memory_space<vmem>>, vector<2x136xf32>,
    return
  }
  func.func @transform_0(%arg0: i32) -> (i32, i32) {
    %c0_i32 = arith.constant 0 : i32
    %c0_i32_0 = arith.constant 0 : i32
    return %arg0, %c0_i32 : i32, i32
  }
  func.func @transform_1(%arg0: i32) -> (i32, i32) {
    %c0_i32 = arith.constant 0 : i32
    %c0_i32_0 = arith.constant 0 : i32
    return %arg0, %c0_i32 : i32, i32
  }
}

module attributes {stable_mosaic.version = 11 : i64} {
  func.func @kernel(%arg0: i32, %arg1: memref<2x256xf32, #tpu.memory_space<vmem>>, %arg2: memref<2x136xf32, #tpu.memory_space<vmem>>) attributes {dimension_semantics = [#tpu.dimension_semantics<parallel>], iteration_bounds = array<i64: 1>, scalar_prefetch = 0 : i64, scratch_operands = 0 : i64, tpu.core_type = #tpu.core_type<tc>, window_params = [{transform_indices = @transform_0, window_bounds = array<i64: 2, 256>}, {transform_indices = @transform_1, window_bounds = array<i64: 2, 136>}]} {
    %c0 = arith.constant 0 : index
    %c0_0 = arith.constant 0 : index
    %0 = vector.load %arg1[%c0, %c0_0] : memref<2x256xf32, #tpu.memory_space<vmem>>, vector<2x16xf32>
    %c0_1 = arith.constant 0 : index
    %c0_2 = arith.constant 0 : index
    %1 = vector.load %arg2[%c0_1, %c0_2] : memref<2x136xf32, #tpu.memory_space<vmem>>, vector<2x16xf32>
    tpu.vector_store %arg2[%c0_1, %c0_2], %0 {strides = array<i32>} : memref<2x136xf32, #tpu.memory_space<vmem>>, vector<2x16xf32>,
    %c0_3 = arith.constant 0 : index
    %c17 = arith.constant 17 : index
    %2 = vector.load %arg1[%c0_3, %c17] : memref<2x256xf32, #tpu.memory_space<vmem>>, vector<2x15xf32>
    %c0_4 = arith.constant 0 : index
    %c16 = arith.constant 16 : index
    %3 = vector.load %arg2[%c0_4, %c16] : memref<2x136xf32, #tpu.memory_space<vmem>>, vector<2x15xf32>
    tpu.vector_store %arg2[%c0_4, %c16], %2 {strides = array<i32>} : memref<2x136xf32, #tpu.memory_space<vmem>>, vector<2x15xf32>,
    %c0_5 = arith.constant 0 : index
    %c34 = arith.constant 34 : index
    %4 = vector.load %arg1[%c0_5, %c34] : memref<2x256xf32, #tpu.memory_space<vmem>>, vector<2x14xf32>
    %c0_6 = arith.constant 0 : index
    %c31 = arith.constant 31 : index
    %5 = vector.load %arg2[%c0_6, %c31] : memref<2x136xf32, #tpu.memory_space<vmem>>, vector<2x14xf32>
    tpu.vector_store %arg2[%c0_6, %c31], %4 {strides = array<i32>} : memref<2x136xf32, #tpu.memory_space<vmem>>, vector<2x14xf32>,
    %c0_7 = arith.constant 0 : index
    %c51 = arith.constant 51 : index
    %6 = vector.load %arg1[%c0_7, %c51] : memref<2x256xf32, #tpu.memory_space<vmem>>, vector<2x13xf32>
    %c0_8 = arith.constant 0 : index
    %c45 = arith.constant 45 : index
    %7 = vector.load %arg2[%c0_8, %c45] : memref<2x136xf32, #tpu.memory_space<vmem>>, vector<2x13xf32>
    tpu.vector_store %arg2[%c0_8, %c45], %6 {strides = array<i32>} : memref<2x136xf32, #tpu.memory_space<vmem>>, vector<2x13xf32>,
    %c0_9 = arith.constant 0 : index
    %c68 = arith.constant 68 : index
    %8 = vector.load %arg1[%c0_9, %c68] : memref<2x256xf32, #tpu.memory_space<vmem>>, vector<2x12xf32>
    %c0_10 = arith.constant 0 : index
    %c58 = arith.constant 58 : index
    %9 = vector.load %arg2[%c0_10, %c58] : memref<2x136xf32, #tpu.memory_space<vmem>>, vector<2x12xf32>
    tpu.vector_store %arg2[%c0_10, %c58], %8 {strides = array<i32>} : memref<2x136xf32, #tpu.memory_space<vmem>>, vector<2x12xf32>,
    %c0_11 = arith.constant 0 : index
    %c85 = arith.constant 85 : index
    %10 = vector.load %arg1[%c0_11, %c85] : memref<2x256xf32, #tpu.memory_space<vmem>>, vector<2x11xf32>
    %c0_12 = arith.constant 0 : index
    %c70 = arith.constant 70 : index
    %11 = vector.load %arg2[%c0_12, %c70] : memref<2x136xf32, #tpu.memory_space<vmem>>, vector<2x11xf32>
    tpu.vector_store %arg2[%c0_12, %c70], %10 {strides = array<i32>} : memref<2x136xf32, #tpu.memory_space<vmem>>, vector<2x11xf32>,
    %c0_13 = arith.constant 0 : index
    %c102 = arith.constant 102 : index
    %12 = vector.load %arg1[%c0_13, %c102] : memref<2x256xf32, #tpu.memory_space<vmem>>, vector<2x10xf32>
    %c0_14 = arith.constant 0 : index
    %c81 = arith.constant 81 : index
    %13 = vector.load %arg2[%c0_14, %c81] : memref<2x136xf32, #tpu.memory_space<vmem>>, vector<2x10xf32>
    tpu.vector_store %arg2[%c0_14, %c81], %12 {strides = array<i32>} : memref<2x136xf32, #tpu.memory_space<vmem>>, vector<2x10xf32>,
    %c0_15 = arith.constant 0 : index
    %c119 = arith.constant 119 : index
    %14 = vector.load %arg1[%c0_15, %c119] : memref<2x256xf32, #tpu.memory_space<vmem>>, vector<2x9xf32>
    %c0_16 = arith.constant 0 : index
    %c91 = arith.constant 91 : index
    %15 = vector.load %arg2[%c0_16, %c91] : memref<2x136xf32, #tpu.memory_space<vmem>>, vector<2x9xf32>
    tpu.vector_store %arg2[%c0_16, %c91], %14 {strides = array<i32>} : memref<2x136xf32, #tpu.memory_space<vmem>>, vector<2x9xf32>,
    %c0_17 = arith.constant 0 : index
    %c136 = arith.constant 136 : index
    %16 = vector.load %arg1[%c0_17, %c136] : memref<2x256xf32, #tpu.memory_space<vmem>>, vector<2x8xf32>
    %c0_18 = arith.constant 0 : index
    %c100 = arith.constant 100 : index
    %17 = vector.load %arg2[%c0_18, %c100] : memref<2x136xf32, #tpu.memory_space<vmem>>, vector<2x8xf32>
    tpu.vector_store %arg2[%c0_18, %c100], %16 {strides = array<i32>} : memref<2x136xf32, #tpu.memory_space<vmem>>, vector<2x8xf32>,
    %c0_19 = arith.constant 0 : index
    %c153 = arith.constant 153 : index
    %18 = vector.load %arg1[%c0_19, %c153] : memref<2x256xf32, #tpu.memory_space<vmem>>, vector<2x7xf32>
    %c0_20 = arith.constant 0 : index
    %c108 = arith.constant 108 : index
    %19 = vector.load %arg2[%c0_20, %c108] : memref<2x136xf32, #tpu.memory_space<vmem>>, vector<2x7xf32>
    tpu.vector_store %arg2[%c0_20, %c108], %18 {strides = array<i32>} : memref<2x136xf32, #tpu.memory_space<vmem>>, vector<2x7xf32>,
    %c0_21 = arith.constant 0 : index
    %c170 = arith.constant 170 : index
    %20 = vector.load %arg1[%c0_21, %c170] : memref<2x256xf32, #tpu.memory_space<vmem>>, vector<2x6xf32>
    %c0_22 = arith.constant 0 : index
    %c115 = arith.constant 115 : index
    %21 = vector.load %arg2[%c0_22, %c115] : memref<2x136xf32, #tpu.memory_space<vmem>>, vector<2x6xf32>
    tpu.vector_store %arg2[%c0_22, %c115], %20 {strides = array<i32>} : memref<2x136xf32, #tpu.memory_space<vmem>>, vector<2x6xf32>,
    %c0_23 = arith.constant 0 : index
    %c187 = arith.constant 187 : index
    %22 = vector.load %arg1[%c0_23, %c187] : memref<2x256xf32, #tpu.memory_space<vmem>>, vector<2x5xf32>
    %c0_24 = arith.constant 0 : index
    %c121 = arith.constant 121 : index
    %23 = vector.load %arg2[%c0_24, %c121] : memref<2x136xf32, #tpu.memory_space<vmem>>, vector<2x5xf32>
    tpu.vector_store %arg2[%c0_24, %c121], %22 {strides = array<i32>} : memref<2x136xf32, #tpu.memory_space<vmem>>, vector<2x5xf32>,
    %c0_25 = arith.constant 0 : index
    %c204 = arith.constant 204 : index
    %24 = vector.load %arg1[%c0_25, %c204] : memref<2x256xf32, #tpu.memory_space<vmem>>, vector<2x4xf32>
    %c0_26 = arith.constant 0 : index
    %c126 = arith.constant 126 : index
    %25 = vector.load %arg2[%c0_26, %c126] : memref<2x136xf32, #tpu.memory_space<vmem>>, vector<2x4xf32>
    tpu.vector_store %arg2[%c0_26, %c126], %24 {strides = array<i32>} : memref<2x136xf32, #tpu.memory_space<vmem>>, vector<2x4xf32>,
    %c0_27 = arith.constant 0 : index
    %c221 = arith.constant 221 : index
    %26 = vector.load %arg1[%c0_27, %c221] : memref<2x256xf32, #tpu.memory_space<vmem>>, vector<2x3xf32>
    %c0_28 = arith.constant 0 : index
    %c130 = arith.constant 130 : index
    %27 = vector.load %arg2[%c0_28, %c130] : memref<2x136xf32, #tpu.memory_space<vmem>>, vector<2x3xf32>
    tpu.vector_store %arg2[%c0_28, %c130], %26 {strides = array<i32>} : memref<2x136xf32, #tpu.memory_space<vmem>>, vector<2x3xf32>,
    %c0_29 = arith.constant 0 : index
    %c238 = arith.constant 238 : index
    %28 = vector.load %arg1[%c0_29, %c238] : memref<2x256xf32, #tpu.memory_space<vmem>>, vector<2x2xf32>
    %c0_30 = arith.constant 0 : index
    %c133 = arith.constant 133 : index
    %29 = vector.load %arg2[%c0_30, %c133] : memref<2x136xf32, #tpu.memory_space<vmem>>, vector<2x2xf32>
    tpu.vector_store %arg2[%c0_30, %c133], %28 {strides = array<i32>} : memref<2x136xf32, #tpu.memory_space<vmem>>, vector<2x2xf32>,
    %c0_31 = arith.constant 0 : index
    %c255 = arith.constant 255 : index
    %30 = vector.load %arg1[%c0_31, %c255] : memref<2x256xf32, #tpu.memory_space<vmem>>, vector<2x1xf32>
    %c0_32 = arith.constant 0 : index
    %c135 = arith.constant 135 : index
    %31 = vector.load %arg2[%c0_32, %c135] : memref<2x136xf32, #tpu.memory_space<vmem>>, vector<2x1xf32>
    tpu.vector_store %arg2[%c0_32, %c135], %30 {strides = array<i32>} : memref<2x136xf32, #tpu.memory_space<vmem>>, vector<2x1xf32>,
    return
  }
  func.func @transform_0(%arg0: i32) -> (i32, i32) {
    %c0_i32 = arith.constant 0 : i32
    %c0_i32_0 = arith.constant 0 : i32
    return %arg0, %c0_i32 : i32, i32
  }
  func.func @transform_1(%arg0: i32) -> (i32, i32) {
    %c0_i32 = arith.constant 0 : i32
    %c0_i32_0 = arith.constant 0 : i32
    return %arg0, %c0_i32 : i32, i32
  }
}

</mosaic_0001>

<bundles_post_ra>
// kernel: tpu_custom_call.1
= control target key start
LH: loop header
LB: loop body
LE: loop exit
PB: predicated region body
PF: predicated region fallthrough
CT: control target
= control target key end

     0   :  { %6 = vsyncpa [#allocation3], 0  ;;  %s270_s0 = inlined_call_operand.hbm [shape: f32[2,256], index: 0, kind: input, shape index: {}]   ;;  %s271_s1 = inlined_call_operand.hbm [shape: f32[2,136], index: 1, kind: output, shape index: {}]  }
   0x1   :  { %7 = vsyncpa [#allocation4], 0  ;;  %s13_s8 = sshll.u32 %s270_s0, 4  ;;  %s227_s9 = smov [#allocation2]   ;;  %s14_s8 = int_to_ptr.hbm [resolvable:$true] %s13_s8 }
   0x2   :  { %s15_s10 = sshll.u32 %s227_s9, 4  ;;  %s16_s10 = int_to_ptr.vmem [resolvable:$true] %s15_s10 }
   0x3   :  { %18 = dma.hbm_to_vmem [thread:$0]  %s14_s8, 64, %s16_s10, [#allocation3]  }
   0x4   :  { %223 = dma.done.wait [#allocation3], 64  }
   0x5   :  { %224 = vsyncadd [#allocation3], 4294967232  ;;  %v257_v0 = vld [vmem:[#allocation2] sm:$0x3]  ;;  %s228_s11 = smov 127   ;;  %s229_s0 = smov 125  }
   0x6   :  { %26 = vst [vmem:[#allocation1] ss:$4 sm:$0xff] %v257_v0  ;;  %s230_s12 = smov 122   ;;  %s231_s13 = smov 118   ;;  %v24_v7 = vld [vmem:[#allocation2 + $0x2] sm:$0x3] }
   0x7   :  { %s232_s14 = smov 113   ;;  %s233_s15 = smov 107   ;;  %vm102_vm0 = vcmask 130048   ;;  %vm104_vm1 = vcmask 252928   ;;  %vm106_vm2 = vcmask 367616   ;;  %vm108_vm3 = vcmask 474112  }
   0x8   :  { %s234_s16 = smov 100   ;;  %s235_s17 = smov 92   ;;  %vm110_vm4 = vcmask 572416   ;;  %vm112_vm5 = vcmask 662528   ;;  %vm114_vm6 = vcmask 744448   ;;  %vm116_vm7 = vcmask 818176  }
   0x9   :  { %s236_s18 = smov 83   ;;  %s237_s19 = smov 50   ;;  %vm118_vm8 = vcmask 883712   ;;  %vm126_vm9 = vcmask 15360   ;;  %vm120_vm10 = vcmask 941056   ;;  %vm128_vm11 = vcmask 39936  }
   0xa   :  { %s238_s20 = smov 37   ;;  %s239_s21 = smov 73   ;;  %vm122_vm12 = vcmask 990208   ;;  %vm130_vm13 = vcmask 56320   ;;  %vm135_vm14 = vcmask 1041408   ;;  %vm138_vm15 = vcmask 60418  }
   0xb   :  { %s240_s22 = smov 23   ;;  %s241_s23 = smov 8  }
   0xc   :  { %s242_s24 = smov 62   ;;  %s243_s25 = smov [#allocation5]  }
   0xd   :  { %v27_v1 = vld.sshfl [vmem:[#allocation1] sm:$0xff pattern:$0x73625140]  ;;  %s146_s26 = sshll.u32 %s243_s25, 4  ;;  %s148_s29 = sshll.u32 %s271_s1, 4  ;;  %s147_s26 = int_to_ptr.vmem [resolvable:$true] %s146_s26  ;;  %s149_s29 = int_to_ptr.hbm [resolvable:$true] %s148_s29 }
   0xe   :  { %31 = vst [vmem:[#allocation1] ss:$4 sm:$0xff] %v257_v0  ;;  %28 = vrot.lane.b32.xlu0 %v27_v1, %s228_s11 }
  0x15   :  { %v32_v2 = vld.sshfl [vmem:[#allocation1] sm:$0xff pattern:$0x73625140] }
  0x16   :  { %36 = vst [vmem:[#allocation1] ss:$4 sm:$0xff] %v257_v0  ;;  %33 = vrot.lane.b32.xlu0 %v32_v2, %s229_s0 }
  0x1d   :  { %v37_v3 = vld.sshfl [vmem:[#allocation1] sm:$0xff pattern:$0x73625140] }
  0x1e   :  { %38 = vrot.lane.b32.xlu1 %v37_v3, %s230_s12  ;;  %41 = vst [vmem:[#allocation1] ss:$4 sm:$0xff] %v257_v0 }
  0x25   :  { %v42_v4 = vld.sshfl [vmem:[#allocation1] sm:$0xff pattern:$0x73625140] }
  0x26   :  { %43 = vrot.lane.b32.xlu1 %v42_v4, %s231_s13  ;;  %46 = vst [vmem:[#allocation1] ss:$4 sm:$0xff] %v257_v0 }
  0x2d   :  { %v47_v5 = vld.sshfl [vmem:[#allocation1] sm:$0xff pattern:$0x73625140] }
  0x2e   :  { %51 = vst [vmem:[#allocation1] ss:$4 sm:$0xff] %v257_v0  ;;  %48 = vrot.lane.b32.xlu2 %v47_v5, %s232_s14 }
  0x35   :  { %v52_v6 = vld.sshfl [vmem:[#allocation1] sm:$0xff pattern:$0x73625140] }
  0x36   :  { %56 = vst [vmem:[#allocation1] ss:$4 sm:$0xff] %v257_v0  ;;  %53 = vrot.lane.b32.xlu2 %v52_v6, %s233_s15 }
  0x3d   :  { %v57_v8 = vld.sshfl [vmem:[#allocation1] sm:$0xff pattern:$0x73625140] }
  0x3e   :  { %62 = vst [vmem:[#allocation1] ss:$4 sm:$0xff] %v24_v7  ;;  %58 = vrot.lane.b32.xlu0 %v57_v8, %s234_s16 }
  0x45   :  { %v63_v9 = vld.sshfl [vmem:[#allocation1] sm:$0xff pattern:$0x73625140] }
  0x46   :  { %64 = vrot.lane.b32.xlu1 %v63_v9, %s235_s17  ;;  %67 = vst [vmem:[#allocation1] ss:$4 sm:$0xff] %v24_v7 }
  0x4d   :  { %v68_v10 = vld.sshfl [vmem:[#allocation1] sm:$0xff pattern:$0x73625140] }
  0x4e   :  { %69 = vrot.lane.b32.xlu1 %v68_v10, %s236_s18  ;;  %72 = vst [vmem:[#allocation1] ss:$4 sm:$0xff] %v24_v7 }
  0x55   :  { %v73_v11 = vld.sshfl [vmem:[#allocation1] sm:$0xff pattern:$0x73625140] }
  0x56   :  { %77 = vst [vmem:[#allocation1] ss:$4 sm:$0xff] %v24_v7 }
  0x5d   :  { %v78_v12 = vld.sshfl [vmem:[#allocation1] sm:$0xff pattern:$0x73625140] }
  0x5e   :  { %82 = vst [vmem:[#allocation1] ss:$4 sm:$0xff] %v24_v7 }
  0x65   :  { %v83_v13 = vld.sshfl [vmem:[#allocation1] sm:$0xff pattern:$0x73625140] }
  0x66   :  { %87 = vst [vmem:[#allocation1] ss:$4 sm:$0xff] %v24_v7  ;;  %84 = vrot.lane.b32.xlu2 %v83_v13, %s237_s19 }
  0x6d   :  { %v88_v14 = vld.sshfl [vmem:[#allocation1] sm:$0xff pattern:$0x73625140] }
  0x6e   :  { %89 = vrot.lane.b32.xlu0 %v88_v14, %s238_s20  ;;  %92 = vst [vmem:[#allocation1] ss:$4 sm:$0xff] %v24_v7 }
  0x75   :  { %v93_v15 = vld.sshfl [vmem:[#allocation1] sm:$0xff pattern:$0x73625140] }
  0x76   :  { %97 = vst [vmem:[#allocation1] ss:$4 sm:$0xff] %v24_v7  ;;  %74 = vrot.lane.b32.xlu0 %v73_v11, %s239_s21  ;;  %94 = vrot.lane.b32.xlu2 %v93_v15, %s240_s22 }
  0x7d   :  { %v98_v16 = vld.sshfl [vmem:[#allocation1] sm:$0xff pattern:$0x73625140] }
  0x7e   :  { %99 = vrot.lane.b32.xlu1 %v98_v16, %s241_s23  ;;  %79 = vrot.lane.b32.xlu2 %v78_v12, %s242_s24 }
  0x80   :  { %v29_v17 = vpop.permute.xlu0 %28 }
  0x81   :  { %v103_v22 = vsel %vm102_vm0, %v257_v0, %v29_v17  ;;  %vm124_vm0 = vcmask 1031168  }
  0x88   :  { %v49_v18 = vpop.permute.xlu2 %48  ;;  %v34_v20 = vpop.permute.xlu0 %33 }
  0x89   :  { %v105_v24 = vsel %vm104_vm1, %v103_v22, %v34_v20  ;;  %vm139_vm1 = vmor %vm138_vm15, %vm135_vm14 }
  0x90   :  { %v39_v19 = vpop.permute.xlu1 %38  ;;  %v54_v21 = vpop.permute.xlu2 %53 }
  0x91   :  { %v107_v27 = vsel %vm106_vm2, %v105_v24, %v39_v19 }
  0x98   :  { %v44_v23 = vpop.permute.xlu1 %43 }
  0x99   :  { %v109_v28 = vsel %vm108_vm3, %v107_v27, %v44_v23 }
  0x9a   :  { %v111_v30 = vsel %vm110_vm4, %v109_v28, %v49_v18 }
  0x9b   :  { %v113_v32 = vsel %vm112_vm5, %v111_v30, %v54_v21 }
  0xb0   :  { %v59_v25 = vpop.permute.xlu0 %58 }
  0xb1   :  { %v115_v34 = vsel %vm114_vm6, %v113_v32, %v59_v25 }
  0xb8   :  { %v65_v29 = vpop.permute.xlu1 %64 }
  0xb9   :  { %v117_v36 = vsel %vm116_vm7, %v115_v34, %v65_v29 }
  0xc0   :  { %v85_v26 = vpop.permute.xlu2 %84  ;;  %v70_v35 = vpop.permute.xlu1 %69 }
  0xc1   :  { %v119_v38 = vsel %vm118_vm8, %v117_v36, %v70_v35 }
  0xd0   :  { %v95_v33 = vpop.permute.xlu2 %94 }
  0xd8   :  { %v80_v41 = vpop.permute.xlu2 %79 }
  0xe0   :  { %v90_v31 = vpop.permute.xlu0 %89 }
  0xe1   :  { %v127_v39 = vsel %vm126_vm9, %v85_v26, %v90_v31 }
  0xe2   :  { %v129_v42 = vsel %vm128_vm11, %v127_v39, %v95_v33 }
  0xe8   :  { %v75_v37 = vpop.permute.xlu0 %74 }
  0xe9   :  { %v121_v40 = vsel %vm120_vm10, %v119_v38, %v75_v37 }
  0xea   :  { %v123_v43 = vsel %vm122_vm12, %v121_v40, %v80_v41 }
  0xeb   :  { %v125_v47 = vsel %vm124_vm0, %v123_v43, %v85_v26 }
  0xf0   :  { %v100_v44 = vpop.permute.xlu1 %99 }
  0xf1   :  { %v131_v45 = vsel %vm130_vm13, %v129_v42, %v100_v44 }
  0xf2   :  { %v134_v46 = vrot.slane %v131_v45, 6 }
  0xf4   :  { %v136_v48 = vsel %vm135_vm14, %v125_v47, %v134_v46 }
  0xf5   :  { %140 = vst.msk [vmem:[#allocation5] sm:$0xf] %vm139_vm1, %v136_v48 }
  0xf6   :  { %151 = dma.vmem_to_hbm [thread:$0]  %s147_s26, 64, %s149_s29, [#allocation4]  }
  0xf7   :  { %225 = dma.done.wait [#allocation4], 64  }
  0xf8   :  { %226 = vsyncadd [#allocation4], 4294967232 }
  0xf9   :  { %156 = vsyncpa [#allocation3], 1 }
  0xfa   :  { %157 = vsyncpa [#allocation4], 1 }

// kernel: tpu_custom_call.1
= control target key start
LH: loop header
LB: loop body
LE: loop exit
PB: predicated region body
PF: predicated region fallthrough
CT: control target
= control target key end

     0   :  { %6 = vsyncpa [#allocation3], 0  ;;  %s255_s0 = inlined_call_operand.hbm [shape: f32[2,256], index: 0, kind: input, shape index: {}]   ;;  %s256_s1 = inlined_call_operand.hbm [shape: f32[2,136], index: 1, kind: output, shape index: {}]  }
   0x1   :  { %7 = vsyncpa [#allocation4], 0  ;;  %s13_s8 = sshll.u32 %s255_s0, 4  ;;  %s222_s9 = smov [#allocation2]   ;;  %s14_s8 = int_to_ptr.hbm [resolvable:$true] %s13_s8 }
   0x2   :  { %s15_s10 = sshll.u32 %s222_s9, 4  ;;  %s16_s10 = int_to_ptr.vmem [resolvable:$true] %s15_s10 }
   0x3   :  { %18 = dma.hbm_to_vmem [thread:$0]  %s14_s8, 64, %s16_s10, [#allocation3]  }
   0x4   :  { %218 = dma.done.wait [#allocation3], 64  }
   0x5   :  { %219 = vsyncadd [#allocation3], 4294967232  ;;  %v26_v0 = vld [vmem:[#allocation2] sm:$0x3]  ;;  %s223_s11 = smov 127   ;;  %s224_s12 = smov 122  }
   0x6   :  { %v40_v1 = vld [vmem:[#allocation2] sm:$0x3]  ;;  %28 = vrot.lane.b32.xlu0 %v26_v0, %s223_s11  ;;  %s225_s13 = smov 113   ;;  %s226_s0 = smov 125   ;;  %v75_v7 = vld [vmem:[#allocation2 + $0x2] sm:$0x3] }
   0x7   :  { %42 = vrot.lane.b32.xlu1 %v40_v1, %s224_s12  ;;  %v54_v2 = vld [vmem:[#allocation2] sm:$0x3]  ;;  %s227_s14 = smov 118   ;;  %s228_s15 = smov 107   ;;  %v82_v8 = vld [vmem:[#allocation2 + $0x2] sm:$0x3] }
   0x8   :  { %56 = vrot.lane.b32.xlu2 %v54_v2, %s225_s13  ;;  %v33_v3 = vld [vmem:[#allocation2] sm:$0x3]  ;;  %s229_s16 = smov 100   ;;  %s230_s17 = smov 92   ;;  %v103_v9 = vld [vmem:[#allocation2 + $0x2] sm:$0x3] }
   0x9   :  { %v47_v4 = vld [vmem:[#allocation2] sm:$0x3]  ;;  %s231_s18 = smov 83   ;;  %v89_v10 = vld [vmem:[#allocation2 + $0x2] sm:$0x3]  ;;  %s232_s19 = smov 50  }
   0xa   :  { %v61_v5 = vld [vmem:[#allocation2] sm:$0x3]  ;;  %v96_v11 = vld [vmem:[#allocation2 + $0x2] sm:$0x3]  ;;  %s233_s20 = smov 73   ;;  %s234_s21 = smov 62  }
   0xb   :  { %v68_v6 = vld [vmem:[#allocation2] sm:$0x3]  ;;  %v115_v12 = vld [vmem:[#allocation2 + $0x2] sm:$0x3]  ;;  %s235_s22 = smov 37   ;;  %s236_s23 = smov 23  }
   0xc   :  { %v122_v13 = vld [vmem:[#allocation2 + $0x2] sm:$0x3]  ;;  %s237_s24 = smov 8   ;;  %vm24_vm0 = vcmask 123904   ;;  %v23_v15 = vld [vmem:[#allocation2] sm:$0x3] }
   0xd   :  { %v129_v14 = vld [vmem:[#allocation2 + $0x2] sm:$0x3]  ;;  %25 = vst.msk [vmem:[#allocation5] sm:$0x3] %vm24_vm0, %v23_v15  ;;  %vm31_vm1 = vcmask 246912   ;;  %vm38_vm2 = vcmask 361720  }
   0xe   :  { %35 = vrot.lane.b32.xlu0 %v33_v3, %s226_s0  ;;  %vm45_vm3 = vcmask 468328   ;;  %vm52_vm4 = vcmask 566736   ;;  %vm59_vm5 = vcmask 656944   ;;  %vm66_vm6 = vcmask 738952   ;;  %s238_s25 = smov [#allocation5]   ;;  %s143_s29 = sshll.u32 %s256_s1, 4  ;;  %s144_s29 = int_to_ptr.hbm [resolvable:$true] %s143_s29 }
   0xf   :  { %49 = vrot.lane.b32.xlu1 %v47_v4, %s227_s14  ;;  %vm73_vm7 = vcmask 812760   ;;  %vm80_vm8 = vcmask 878368   ;;  %vm87_vm9 = vcmask 935776   ;;  %vm94_vm10 = vcmask 984984   ;;  %s141_s26 = sshll.u32 %s238_s25, 4  ;;  %s142_s26 = int_to_ptr.vmem [resolvable:$true] %s141_s26 }
  0x10   :  { %63 = vrot.lane.b32.xlu2 %v61_v5, %s228_s15  ;;  %vm111_vm11 = vcmask 1042416   ;;  %vm112_vm12 = vcmask 11266   ;;  %vm101_vm13 = vcmask 1025992   ;;  %vm108_vm14 = vcmask 408576  }
  0x11   :  { %vm113_vm15 = vmor %vm112_vm12, %vm111_vm11  ;;  %vm120_vm0 = vcmask 33808  }
  0x16   :  { %70 = vrot.lane.b32.xlu0 %v68_v6, %s229_s16 }
  0x17   :  { %77 = vrot.lane.b32.xlu1 %v75_v7, %s230_s17 }
  0x18   :  { %84 = vrot.lane.b32.xlu2 %v82_v8, %s231_s18 }
  0x1e   :  { %105 = vrot.lane.b32.xlu0 %v103_v9, %s232_s19 }
  0x1f   :  { %91 = vrot.lane.b32.xlu1 %v89_v10, %s233_s20 }
  0x20   :  { %98 = vrot.lane.b32.xlu2 %v96_v11, %s234_s21 }
  0x26   :  { %117 = vrot.lane.b32.xlu0 %v115_v12, %s235_s22 }
  0x27   :  { %124 = vrot.lane.b32.xlu1 %v122_v13, %s236_s23 }
  0x28   :  { %131 = vrot.lane.b32.xlu2 %v129_v14, %s237_s24 }
  0x62   :  { %v57_v16 = vpop.permute.xlu2 %56 }
  0x6a   :  { %v64_v19 = vpop.permute.xlu2 %63 }
  0x72   :  { %v85_v22 = vpop.permute.xlu2 %84 }
  0x78   :  { %v29_v17 = vpop.permute.xlu0 %28 }
  0x79   :  { %v43_v18 = vpop.permute.xlu1 %42  ;;  %32 = vst.msk [vmem:[#allocation5] sm:$0x3] %vm31_vm1, %v29_v17  ;;  %vm127_vm1 = vcmask 50216  }
  0x7a   :  { %v99_v25 = vpop.permute.xlu2 %98 }
  0x80   :  { %v36_v20 = vpop.permute.xlu0 %35 }
  0x81   :  { %v50_v21 = vpop.permute.xlu1 %49  ;;  %39 = vst.msk [vmem:[#allocation5] sm:$0x3] %vm38_vm2, %v36_v20  ;;  %vm134_vm2 = vcmask 58424  }
  0x82   :  { %46 = vst.msk [vmem:[#allocation5] sm:$0x3] %vm45_vm3, %v43_v18  ;;  %v132_v30 = vpop.permute.xlu2 %131 }
  0x83   :  { %53 = vst.msk [vmem:[#allocation5] sm:$0x3] %vm52_vm4, %v50_v21 }
  0x84   :  { %60 = vst.msk [vmem:[#allocation5] sm:$0x3] %vm59_vm5, %v57_v16 }
  0x85   :  { %67 = vst.msk [vmem:[#allocation5] sm:$0x3] %vm66_vm6, %v64_v19 }
  0x88   :  { %v71_v23 = vpop.permute.xlu0 %70 }
  0x89   :  { %v78_v24 = vpop.permute.xlu1 %77  ;;  %74 = vst.msk [vmem:[#allocation5] sm:$0x3] %vm73_vm7, %v71_v23 }
  0x8a   :  { %81 = vst.msk [vmem:[#allocation5] sm:$0x3] %vm80_vm8, %v78_v24 }
  0x8b   :  { %88 = vst.msk [vmem:[#allocation5] sm:$0x3] %vm87_vm9, %v85_v22 }
  0x90   :  { %v106_v26 = vpop.permute.xlu0 %105 }
  0x91   :  { %v92_v27 = vpop.permute.xlu1 %91  ;;  %v107_v28 = vrot.slane %v106_v26, 6 }
  0x92   :  { %95 = vst.msk [vmem:[#allocation5] sm:$0x3] %vm94_vm10, %v92_v27 }
  0x93   :  { %102 = vst.msk [vmem:[#allocation5] sm:$0x3] %vm101_vm13, %v99_v25  ;;  %v109_v29 = vsel %vm108_vm14, %v107_v28, %v106_v26 }
  0x94   :  { %114 = vst.msk [vmem:[#allocation5] sm:$0xf] %vm113_vm15, %v109_v29 }
  0x98   :  { %v118_v31 = vpop.permute.xlu0 %117 }
  0x99   :  { %v125_v32 = vpop.permute.xlu1 %124  ;;  %121 = vst.msk [vmem:[#allocation5 + $0x2] sm:$0x3] %vm120_vm0, %v118_v31 }
  0x9a   :  { %128 = vst.msk [vmem:[#allocation5 + $0x2] sm:$0x3] %vm127_vm1, %v125_v32 }
  0x9b   :  { %135 = vst.msk [vmem:[#allocation5 + $0x2] sm:$0x3] %vm134_vm2, %v132_v30 }
  0x9c   :  { %146 = dma.vmem_to_hbm [thread:$0]  %s142_s26, 64, %s144_s29, [#allocation4]  }
  0x9d   :  { %220 = dma.done.wait [#allocation4], 64  }
  0x9e   :  { %221 = vsyncadd [#allocation4], 4294967232 }
  0x9f   :  { %151 = vsyncpa [#allocation3], 1 }
  0xa0   :  { %152 = vsyncpa [#allocation4], 1 }

</bundles_post_ra>
